<compile_context>
chip_gen: v6e
topology: v6e:2x2x1
jax: 0.10.0
libtpu: 0.0.40
codegen_flags: <defaults>
</compile_context>

<pallas_src>
import jax
import jax.numpy as jnp
from jax.experimental import pallas as pl
from jax.experimental.pallas import tpu as pltpu


def _make_ct1x1_kernel(n_batch: int, c_out: int):
    def kernel(wb_ref, x_ref, o_ref):
        # wb_ref: SMEM (2, Cout)      -- row 0 = weights, row 1 = biases
        # x_ref : VMEM (N, HW)        -- input planes, lane-dense last dim
        # o_ref : VMEM (N*Cout, HW)   -- one contiguous output slab
        for n in range(n_batch):
            x_row = x_ref[pl.ds(n, 1), :]                 # (1, HW)
            for c in range(c_out):
                w = wb_ref[0, c]                          # scalar splat (SMEM)
                b = wb_ref[1, c]
                o_ref[pl.ds(n * c_out + c, 1), :] = x_row * w + b
    return kernel


def conv_transpose_1x1_s1(x, w, b):
    """ConvTranspose2d(in=1, out=Cout, kernel_size=1, stride=1, padding=0), NCHW.

    x: (N, 1, H, W);  w: (1, Cout, 1, 1);  b: (Cout,).  Returns (N, Cout, H, W).
    """
    N, Cin, H, W = x.shape
    assert Cin == 1
    Cout = w.shape[1]
    HW = H * W  # 16*16 = 256 -> multiple of 128 lanes (unmasked stores)

    x_flat = x.reshape(N, HW)
    wb = jnp.stack([w.reshape(Cout), b.reshape(Cout)], axis=0).astype(x.dtype)  # (2, Cout)

    itemsize = jnp.dtype(x.dtype).itemsize
    cost = pl.CostEstimate(
        flops=2 * N * Cout * HW,
        transcendentals=0,
        bytes_accessed=(N * HW + 2 * Cout + N * Cout * HW) * itemsize,
    )

    y_flat = pl.pallas_call(
        _make_ct1x1_kernel(N, Cout),
        out_shape=jax.ShapeDtypeStruct((N * Cout, HW), x.dtype),
        in_specs=[
            pl.BlockSpec(memory_space=pltpu.MemorySpace.SMEM),   # packed w/b
            pl.BlockSpec(memory_space=pltpu.MemorySpace.VMEM),   # x, whole array
        ],
        out_specs=pl.BlockSpec(memory_space=pltpu.MemorySpace.VMEM),
        cost_estimate=cost,
    )(wb, x_flat)

    return y_flat.reshape(N, Cout, H, W)


@jax.jit
def forward(x1, x2, w1, b1, w2, b2):
    """Mirrors Model.forward: only v1 is returned.

    v2 (stride-2 transposed conv of x2) and v3..v6 (flattens) are dead in the
    original module (never returned), so they are elided here rather than
    executed — identical output, no wasted launches or HBM traffic.
    """
    v1 = conv_transpose_1x1_s1(x1, w1, b1)
    return v1


if __name__ == "__main__":
    key = jax.random.PRNGKey(0)
    k1, k2, k3, k4, k5, k6 = jax.random.split(key, 6)

    # Inputs consistent with ConvTranspose2d(in_channels=1, ...): NCHW with C=1.
    x1 = jax.random.normal(k1, (2, 1, 16, 16), jnp.float32)
    x2 = jax.random.normal(k2, (2, 1, 32, 32), jnp.float32)

    # ConvTranspose2d(1, 3, 1) params: weight (in=1, out=3, 1, 1), bias (3,).
    w1 = jax.random.uniform(k3, (1, 3, 1, 1), jnp.float32, minval=-1.0, maxval=1.0)
    b1 = jax.random.uniform(k4, (3,), jnp.float32, minval=-1.0, maxval=1.0)
    w2 = jax.random.uniform(k5, (1, 3, 1, 1), jnp.float32, minval=-1.0, maxval=1.0)
    b2 = jax.random.uniform(k6, (3,), jnp.float32, minval=-1.0, maxval=1.0)

    out = jax.block_until_ready(forward(x1, x2, w1, b1, w2, b2))

    # Pure-JAX reference for the stride-1 1x1 transposed conv.
    ref = x1 * w1.reshape(1, 3, 1, 1) + b1.reshape(1, 3, 1, 1)
    assert out.shape == (2, 3, 16, 16)
    assert jnp.allclose(out, ref, atol=1e-5, rtol=1e-5)

    print("KERNEL_OK")
</pallas_src>

<mosaic_0001>
module attributes {stable_mosaic.version = 11 : i64} {
  func.func @kernel(%arg0: memref<2x3xf32, #tpu.memory_space<smem>>, %arg1: memref<2x256xf32, #tpu.memory_space<vmem>>, %arg2: memref<6x256xf32, #tpu.memory_space<vmem>>) attributes {dimension_semantics = [], scalar_prefetch = 0 : i64, scratch_operands = 0 : i64, tpu.core_type = #tpu.core_type<tc>} {
    %c0 = arith.constant 0 : index
    %c0_0 = arith.constant 0 : index
    %0 = vector.load %arg1[%c0, %c0_0] : memref<2x256xf32, #tpu.memory_space<vmem>>, vector<1x256xf32>
    %c0_1 = arith.constant 0 : index
    %c0_2 = arith.constant 0 : index
    %1 = memref.load %arg0[%c0_1, %c0_2] : memref<2x3xf32, #tpu.memory_space<smem>>
    %c1 = arith.constant 1 : index
    %c0_3 = arith.constant 0 : index
    %2 = memref.load %arg0[%c1, %c0_3] : memref<2x3xf32, #tpu.memory_space<smem>>
    %3 = vector.broadcast %1 : f32 to vector<1x256xf32>
    %4 = arith.mulf %0, %3 : vector<1x256xf32>
    %5 = vector.broadcast %2 : f32 to vector<1x256xf32>
    %6 = arith.addf %4, %5 : vector<1x256xf32>
    %c0_4 = arith.constant 0 : index
    %c0_5 = arith.constant 0 : index
    %7 = vector.load %arg2[%c0_4, %c0_5] : memref<6x256xf32, #tpu.memory_space<vmem>>, vector<1x256xf32>
    tpu.vector_store %arg2[%c0_4, %c0_5], %6 {strides = array<i32>} : memref<6x256xf32, #tpu.memory_space<vmem>>, vector<1x256xf32>,
    %c0_6 = arith.constant 0 : index
    %c1_7 = arith.constant 1 : index
    %8 = memref.load %arg0[%c0_6, %c1_7] : memref<2x3xf32, #tpu.memory_space<smem>>
    %c1_8 = arith.constant 1 : index
    %c1_9 = arith.constant 1 : index
    %9 = memref.load %arg0[%c1_8, %c1_9] : memref<2x3xf32, #tpu.memory_space<smem>>
    %10 = vector.broadcast %8 : f32 to vector<1x256xf32>
    %11 = arith.mulf %0, %10 : vector<1x256xf32>
    %12 = vector.broadcast %9 : f32 to vector<1x256xf32>
    %13 = arith.addf %11, %12 : vector<1x256xf32>
    %c1_10 = arith.constant 1 : index
    %c0_11 = arith.constant 0 : index
    %14 = vector.load %arg2[%c1_10, %c0_11] : memref<6x256xf32, #tpu.memory_space<vmem>>, vector<1x256xf32>
    tpu.vector_store %arg2[%c1_10, %c0_11], %13 {strides = array<i32>} : memref<6x256xf32, #tpu.memory_space<vmem>>, vector<1x256xf32>,
    %c0_12 = arith.constant 0 : index
    %c2 = arith.constant 2 : index
    %15 = memref.load %arg0[%c0_12, %c2] : memref<2x3xf32, #tpu.memory_space<smem>>
    %c1_13 = arith.constant 1 : index
    %c2_14 = arith.constant 2 : index
    %16 = memref.load %arg0[%c1_13, %c2_14] : memref<2x3xf32, #tpu.memory_space<smem>>
    %17 = vector.broadcast %15 : f32 to vector<1x256xf32>
    %18 = arith.mulf %0, %17 : vector<1x256xf32>
    %19 = vector.broadcast %16 : f32 to vector<1x256xf32>
    %20 = arith.addf %18, %19 : vector<1x256xf32>
    %c2_15 = arith.constant 2 : index
    %c0_16 = arith.constant 0 : index
    %21 = vector.load %arg2[%c2_15, %c0_16] : memref<6x256xf32, #tpu.memory_space<vmem>>, vector<1x256xf32>
    tpu.vector_store %arg2[%c2_15, %c0_16], %20 {strides = array<i32>} : memref<6x256xf32, #tpu.memory_space<vmem>>, vector<1x256xf32>,
    %c1_17 = arith.constant 1 : index
    %c0_18 = arith.constant 0 : index
    %22 = vector.load %arg1[%c1_17, %c0_18] : memref<2x256xf32, #tpu.memory_space<vmem>>, vector<1x256xf32>
    %c0_19 = arith.constant 0 : index
    %c0_20 = arith.constant 0 : index
    %23 = memref.load %arg0[%c0_19, %c0_20] : memref<2x3xf32, #tpu.memory_space<smem>>
    %c1_21 = arith.constant 1 : index
    %c0_22 = arith.constant 0 : index
    %24 = memref.load %arg0[%c1_21, %c0_22] : memref<2x3xf32, #tpu.memory_space<smem>>
    %25 = vector.broadcast %23 : f32 to vector<1x256xf32>
    %26 = arith.mulf %22, %25 : vector<1x256xf32>
    %27 = vector.broadcast %24 : f32 to vector<1x256xf32>
    %28 = arith.addf %26, %27 : vector<1x256xf32>
    %c3 = arith.constant 3 : index
    %c0_23 = arith.constant 0 : index
    %29 = vector.load %arg2[%c3, %c0_23] : memref<6x256xf32, #tpu.memory_space<vmem>>, vector<1x256xf32>
    tpu.vector_store %arg2[%c3, %c0_23], %28 {strides = array<i32>} : memref<6x256xf32, #tpu.memory_space<vmem>>, vector<1x256xf32>,
    %c0_24 = arith.constant 0 : index
    %c1_25 = arith.constant 1 : index
    %30 = memref.load %arg0[%c0_24, %c1_25] : memref<2x3xf32, #tpu.memory_space<smem>>
    %c1_26 = arith.constant 1 : index
    %c1_27 = arith.constant 1 : index
    %31 = memref.load %arg0[%c1_26, %c1_27] : memref<2x3xf32, #tpu.memory_space<smem>>
    %32 = vector.broadcast %30 : f32 to vector<1x256xf32>
    %33 = arith.mulf %22, %32 : vector<1x256xf32>
    %34 = vector.broadcast %31 : f32 to vector<1x256xf32>
    %35 = arith.addf %33, %34 : vector<1x256xf32>
    %c4 = arith.constant 4 : index
    %c0_28 = arith.constant 0 : index
    %36 = vector.load %arg2[%c4, %c0_28] : memref<6x256xf32, #tpu.memory_space<vmem>>, vector<1x256xf32>
    tpu.vector_store %arg2[%c4, %c0_28], %35 {strides = array<i32>} : memref<6x256xf32, #tpu.memory_space<vmem>>, vector<1x256xf32>,
    %c0_29 = arith.constant 0 : index
    %c2_30 = arith.constant 2 : index
    %37 = memref.load %arg0[%c0_29, %c2_30] : memref<2x3xf32, #tpu.memory_space<smem>>
    %c1_31 = arith.constant 1 : index
    %c2_32 = arith.constant 2 : index
    %38 = memref.load %arg0[%c1_31, %c2_32] : memref<2x3xf32, #tpu.memory_space<smem>>
    %39 = vector.broadcast %37 : f32 to vector<1x256xf32>
    %40 = arith.mulf %22, %39 : vector<1x256xf32>
    %41 = vector.broadcast %38 : f32 to vector<1x256xf32>
    %42 = arith.addf %40, %41 : vector<1x256xf32>
    %c5 = arith.constant 5 : index
    %c0_33 = arith.constant 0 : index
    %43 = vector.load %arg2[%c5, %c0_33] : memref<6x256xf32, #tpu.memory_space<vmem>>, vector<1x256xf32>
    tpu.vector_store %arg2[%c5, %c0_33], %42 {strides = array<i32>} : memref<6x256xf32, #tpu.memory_space<vmem>>, vector<1x256xf32>,
    return
  }
}

</mosaic_0001>

<bundles_post_ra>
// kernel: forward.1
= control target key start
LH: loop header
LB: loop body
LE: loop exit
PB: predicated region body
PF: predicated region fallthrough
CT: control target
= control target key end

     0   :  { %7 = vsyncpa [#allocation3], 0  ;;  %s179_s0 = inlined_call_operand.vmem [shape: f32[2,3], index: 0, kind: input, shape index: {}]   ;;  %s180_s1 = inlined_call_operand.vmem [shape: f32[2,256], index: 1, kind: input, shape index: {}]   ;;  %s181_s2 = inlined_call_operand.vmem [shape: f32[6,256], index: 2, kind: output, shape index: {}]  }
   0x1   :  { %s14_s11 = sshll.u32 %s179_s0, 4  ;;  %s15_s11 = int_to_ptr.vmem [resolvable:$true] %s14_s11 }
   0x2   :  { %s106_s12 = scalar_lea.vmem %s15_s11, 32  ;;  %p111_p1 = scmp.lt.s32.totalorder %s15_s11, %s15_s11 }
   0x3   :  { %p107_p0 = scmp.ne.s32.totalorder %s15_s11, %s106_s12  ;;  %p112_p2 = scmp.lt.s32.totalorder %s106_s12, %s106_s12 }
   0x5   :  { %p113_p3 = por %p112_p2, %p111_p1 }
   0x7   :  { %p114_p4 = pnand %p113_p3, %p107_p0 }
   0x9   :  { %117 = shalt.err (!%p114_p4)
}
   0xa   :  { %s120_s13 = smov [#allocation2]  }
   0xb   :  { %17 = dma.vmem_to_smem %s15_s11, 32, %s120_s13, [#allocation3]  }
   0xc   :  { %118 = dma.done.wait [#allocation3], 32  }
   0xd   :  { %119 = vsyncadd [#allocation3], 4294967264 }
   0xe   :  { %23 = sfence }
   0xf   :  { %s25_s14 = sld [smem:[#allocation2]]  ;;  %v24_v0 = vld [vmem:[%s180_s1] ss:$2 sm:$0x3]  ;;  %v31_v1 = vlaneseq }
  0x10   :  { %s89_s15 = sld [smem:[#allocation2 + $0x80]]  ;;  %v96_v2 = vld [vmem:[%s180_s1 + $0x1] ss:$2 sm:$0x3] }
  0x11   :  { %s90_s16 = sld [smem:[#allocation2 + $0x1]]  ;;  %vm145_vm0 = vcmp.lt.s32.totalorder %v31_v1, 256 }
  0x12   :  { %s91_s0 = sld [smem:[#allocation2 + $0x81]] }
  0x13   :  { %s93_s19 = sld [smem:[#allocation2 + $0x2]] }
  0x14   :  { %s94_s22 = sld [smem:[#allocation2 + $0x82]] }
  0x15   :  { %v27_v3 = vstv %s25_s14 }
  0x16   :  { %v28_v4 = vmul.f32 %v27_v3, %v24_v0  ;;  %v29_v5 = vstv %s89_s15  ;;  %v60_v6 = vmul.f32 %v96_v2, %v27_v3 }
  0x17   :  { %v39_v8 = vstv %s90_s16 }
  0x18   :  { %v30_v9 = vadd.f32 %v29_v5, %v28_v4  ;;  %v40_v10 = vmul.f32 %v39_v8, %v24_v0  ;;  %v41_v11 = vstv %s91_s0  ;;  %v62_v12 = vadd.f32 %v60_v6, %v29_v5 }
  0x19   :  { %v48_v13 = vstv %s93_s19  ;;  %v69_v14 = vmul.f32 %v96_v2, %v39_v8 }
  0x1a   :  { %35 = vst.msk [vmem:[%s181_s2] ss:$8 sm:$0x3] %vm145_vm0, %v30_v9  ;;  %v42_v15 = vadd.f32 %v41_v11, %v40_v10  ;;  %v49_v16 = vmul.f32 %v48_v13, %v24_v0  ;;  %v50_v17 = vstv %s94_s22  ;;  %98 = vst.msk [vmem:[%s181_s2 + $0x3] ss:$8 sm:$0x3] %vm145_vm0, %v62_v12  ;;  %v78_v18 = vmul.f32 %v96_v2, %v48_v13 }
  0x1b   :  { %v71_v19 = vadd.f32 %v69_v14, %v41_v11 }
  0x1c   :  { %92 = vst.msk [vmem:[%s181_s2 + $0x1] ss:$8 sm:$0x3] %vm145_vm0, %v42_v15  ;;  %v51_v20 = vadd.f32 %v50_v17, %v49_v16  ;;  %v80_v21 = vadd.f32 %v78_v18, %v50_v17 }
  0x1d   :  { %101 = vst.msk [vmem:[%s181_s2 + $0x4] ss:$8 sm:$0x3] %vm145_vm0, %v71_v19 }
  0x1e   :  { %95 = vst.msk [vmem:[%s181_s2 + $0x2] ss:$8 sm:$0x3] %vm145_vm0, %v51_v20  ;;  %104 = vst.msk [vmem:[%s181_s2 + $0x5] ss:$8 sm:$0x3] %vm145_vm0, %v80_v21 }
  0x1f   :  { %88 = vsyncpa [#allocation3], 1 }

</bundles_post_ra>
